<compile_context>
chip_gen: v7x
topology: tpu7x:2x2x1
jax: 0.10.0
libtpu: 0.0.40
codegen_flags: <defaults>
</compile_context>

<pallas_src>
import jax
import jax.numpy as jnp
import numpy as np
from jax.experimental import pallas as pl
from jax.experimental.pallas import tpu as pltpu


def _geometric_loss_kernel(tt_ref, te_ref, tr_ref, re_ref, transl_ref, rot_ref):
    """Statistics for GeometricLoss (lane-dense over the batch).

    tt_ref : (3, B) target_transl^T
    te_ref : (3, B) transl_err^T
    tr_ref : (4, B) target_rot^T  (w, x, y, z)
    re_ref : (4, B) rot_err^T     (w, x, y, z)

    transl_ref : (1,)   f32 SMEM   sum over batch of per-sample SmoothL1 sums
    rot_ref    : (2, B) f32 VMEM
        row 0: || vec( rot_err ⊗ conj(target_rot) ) ||
        row 1: |  w  ( rot_err ⊗ conj(target_rot) ) |
    """
    tt = tt_ref[...].astype(jnp.float32)
    te = te_ref[...].astype(jnp.float32)
    tr = tr_ref[...].astype(jnp.float32)
    re = re_ref[...].astype(jnp.float32)

    # --- SmoothL1 (beta = 1.0, reduction='none'), reduced over components AND batch ---
    d = te - tt
    ad = jnp.abs(d)
    sl1 = jnp.where(ad < 1.0, 0.5 * d * d, ad - 0.5)
    transl_ref[0] = jnp.sum(sl1)                                   # scalar -> SMEM

    # --- relative quaternion t = rot_err ⊗ conj(target_rot)  (CMRNet quatmultiply/quatinv) ---
    q0, q1, q2, q3 = re[0:1, :], re[1:2, :], re[2:3, :], re[3:4, :]
    r0 = tr[0:1, :]
    r1 = -tr[1:2, :]
    r2 = -tr[2:3, :]
    r3 = -tr[3:4, :]
    t0 = r0 * q0 - r1 * q1 - r2 * q2 - r3 * q3
    t1 = r0 * q1 + r1 * q0 - r2 * q3 + r3 * q2
    t2 = r0 * q2 + r1 * q3 + r2 * q0 - r3 * q1
    t3 = r0 * q3 - r1 * q2 + r2 * q1 + r3 * q0

    # NOTE: sqrt has an undefined gradient at 0 (rot_err == target_rot); this loss is
    # reproduced forward-only, matching the PyTorch module's numerics exactly.
    rot_ref[0:1, :] = jnp.sqrt(t1 * t1 + t2 * t2 + t3 * t3)        # (1, B)  (EUP slot)
    rot_ref[1:2, :] = jnp.abs(t0)                                  # (1, B)


def _geometric_loss_stats(target_transl, target_rot, transl_err, rot_err):
    """Runs the Pallas kernel; returns (transl_sum scalar (1,), rot stats (2, B))."""
    B = target_transl.shape[0]
    vmem = pl.BlockSpec(memory_space=pltpu.MemorySpace.VMEM)       # whole array in VMEM
    smem = pl.BlockSpec(memory_space=pltpu.MemorySpace.SMEM)
    return pl.pallas_call(
        _geometric_loss_kernel,
        out_shape=(jax.ShapeDtypeStruct((1,), jnp.float32),
                   jax.ShapeDtypeStruct((2, B), jnp.float32)),
        in_specs=[vmem, vmem, vmem, vmem],
        out_specs=(smem, vmem),
    )(target_transl.T, transl_err.T, target_rot.T, rot_err.T)


def geometric_loss_forward(sx, sq, target_transl, target_rot, transl_err, rot_err):
    """Forward pass of GeometricLoss. Returns total_loss with shape (1,) like PyTorch."""
    B = target_transl.shape[0]
    transl_sum, rot_stats = _geometric_loss_stats(
        target_transl, target_rot, transl_err, rot_err)

    loss_transl = transl_sum[0] * (1.0 / B)
    # TODO(synk): jnp.arctan2 does not have a guaranteed Mosaic lowering on every
    # JAX/TPU version, so the final angle + O(B) mean + uncertainty weighting run as
    # a few scalar XLA ops on the tiny per-sample stats produced by the kernel.
    loss_rot = jnp.mean(2.0 * jnp.arctan2(rot_stats[0], rot_stats[1]))

    sx = sx.astype(jnp.float32)
    sq = sq.astype(jnp.float32)
    total = jnp.exp(-sx) * loss_transl + sx
    total = total + jnp.exp(-sq) * loss_rot + sq
    return total


# ----------------------------------------------------------------------------
# Pure-JAX reference (mirrors the PyTorch module) for a correctness check.
# ----------------------------------------------------------------------------
def _geometric_loss_ref(sx, sq, target_transl, target_rot, transl_err, rot_err):
    d = transl_err - target_transl
    ad = jnp.abs(d)
    sl1 = jnp.where(ad < 1.0, 0.5 * d * d, ad - 0.5)
    loss_transl = jnp.mean(jnp.sum(sl1, axis=1))

    q, r = rot_err, target_rot
    rc = r * jnp.asarray([1.0, -1.0, -1.0, -1.0], dtype=r.dtype)   # conj(target_rot)
    t0 = rc[:, 0] * q[:, 0] - rc[:, 1] * q[:, 1] - rc[:, 2] * q[:, 2] - rc[:, 3] * q[:, 3]
    t1 = rc[:, 0] * q[:, 1] + rc[:, 1] * q[:, 0] - rc[:, 2] * q[:, 3] + rc[:, 3] * q[:, 2]
    t2 = rc[:, 0] * q[:, 2] + rc[:, 1] * q[:, 3] + rc[:, 2] * q[:, 0] - rc[:, 3] * q[:, 1]
    t3 = rc[:, 0] * q[:, 3] - rc[:, 1] * q[:, 2] + rc[:, 2] * q[:, 1] + rc[:, 3] * q[:, 0]
    loss_rot = jnp.mean(2.0 * jnp.arctan2(jnp.sqrt(t1 * t1 + t2 * t2 + t3 * t3), jnp.abs(t0)))

    return jnp.exp(-sx) * loss_transl + sx + jnp.exp(-sq) * loss_rot + sq


if __name__ == "__main__":
    B = 2
    key = jax.random.PRNGKey(0)
    k1, k2, k3, k4 = jax.random.split(key, 4)

    target_transl = jax.random.normal(k1, (B, 3), jnp.float32) * 0.1
    transl_err = jax.random.normal(k2, (B, 3), jnp.float32) * 0.1
    tq = jax.random.normal(k3, (B, 4), jnp.float32)
    target_rot = tq / jnp.linalg.norm(tq, axis=1, keepdims=True)
    pq = jax.random.normal(k4, (B, 4), jnp.float32)
    rot_err = pq / jnp.linalg.norm(pq, axis=1, keepdims=True)

    # nn.Parameter initial values from GeometricLoss.__init__
    sx = jnp.array([0.0], jnp.float32)
    sq = jnp.array([-3.0], jnp.float32)

    fwd = jax.jit(geometric_loss_forward)
    total = jax.block_until_ready(fwd(sx, sq, target_transl, target_rot, transl_err, rot_err))

    ref = _geometric_loss_ref(sx, sq, target_transl, target_rot, transl_err, rot_err)
    np.testing.assert_allclose(np.asarray(total), np.asarray(ref), rtol=1e-5, atol=1e-5)
    assert total.shape == (1,)

    print("KERNEL_OK")
</pallas_src>

<mosaic_0001>
module attributes {stable_mosaic.version = 11 : i64} {
  func.func @_geometric_loss_kernel(%arg0: memref<3x2xf32, #tpu.memory_space<vmem>>, %arg1: memref<3x2xf32, #tpu.memory_space<vmem>>, %arg2: memref<4x2xf32, #tpu.memory_space<vmem>>, %arg3: memref<4x2xf32, #tpu.memory_space<vmem>>, %arg4: memref<1xf32, #tpu.memory_space<smem>>, %arg5: memref<2x2xf32, #tpu.memory_space<vmem>>) attributes {dimension_semantics = [], scalar_prefetch = 0 : i64, scratch_operands = 0 : i64, tpu.core_type = #tpu.core_type<tc>} {
    %c0 = arith.constant 0 : index
    %c0_0 = arith.constant 0 : index
    %0 = vector.load %arg0[%c0, %c0_0] : memref<3x2xf32, #tpu.memory_space<vmem>>, vector<3x2xf32>
    %c0_1 = arith.constant 0 : index
    %c0_2 = arith.constant 0 : index
    %1 = vector.load %arg1[%c0_1, %c0_2] : memref<3x2xf32, #tpu.memory_space<vmem>>, vector<3x2xf32>
    %c0_3 = arith.constant 0 : index
    %c0_4 = arith.constant 0 : index
    %2 = vector.load %arg2[%c0_3, %c0_4] : memref<4x2xf32, #tpu.memory_space<vmem>>, vector<4x2xf32>
    %c0_5 = arith.constant 0 : index
    %c0_6 = arith.constant 0 : index
    %3 = vector.load %arg3[%c0_5, %c0_6] : memref<4x2xf32, #tpu.memory_space<vmem>>, vector<4x2xf32>
    %4 = arith.subf %1, %0 : vector<3x2xf32>
    %5 = math.absf %4 : vector<3x2xf32>
    %cst = arith.constant 1.000000e+00 : f32
    %6 = vector.broadcast %cst : f32 to vector<3x2xf32>
    %7 = arith.cmpf olt, %5, %6 : vector<3x2xf32>
    %cst_7 = arith.constant 5.000000e-01 : f32
    %8 = vector.broadcast %cst_7 : f32 to vector<3x2xf32>
    %9 = arith.mulf %8, %4 : vector<3x2xf32>
    %10 = arith.mulf %9, %4 : vector<3x2xf32>
    %cst_8 = arith.constant 5.000000e-01 : f32
    %11 = vector.broadcast %cst_8 : f32 to vector<3x2xf32>
    %12 = arith.subf %5, %11 : vector<3x2xf32>
    %13 = arith.select %7, %10, %12 : vector<3x2xi1>, vector<3x2xf32>
    %14 = vector.shape_cast %13 : vector<3x2xf32> to vector<1x3x2xf32>
    %cst_9 = arith.constant dense<0.000000e+00> : vector<1xf32>
    %15 = vector.multi_reduction <add>, %14, %cst_9 [1, 2] : vector<1x3x2xf32> to vector<1xf32>
    %16 = vector.shape_cast %15 : vector<1xf32> to vector<1x1x1xf32>
    %17 = vector.extract %16[0, 0, 0] : f32 from vector<1x1x1xf32>
    %c0_10 = arith.constant 0 : index
    %18 = memref.load %arg4[%c0_10] : memref<1xf32, #tpu.memory_space<smem>>
    memref.store %17, %arg4[%c0_10] : memref<1xf32, #tpu.memory_space<smem>>
    %19 = vector.extract_strided_slice %3 {offsets = [0, 0], sizes = [1, 2], strides = [1, 1]} : vector<4x2xf32> to vector<1x2xf32>
    %20 = vector.extract_strided_slice %3 {offsets = [1, 0], sizes = [1, 2], strides = [1, 1]} : vector<4x2xf32> to vector<1x2xf32>
    %21 = vector.extract_strided_slice %3 {offsets = [2, 0], sizes = [1, 2], strides = [1, 1]} : vector<4x2xf32> to vector<1x2xf32>
    %22 = vector.extract_strided_slice %3 {offsets = [3, 0], sizes = [1, 2], strides = [1, 1]} : vector<4x2xf32> to vector<1x2xf32>
    %23 = vector.extract_strided_slice %2 {offsets = [0, 0], sizes = [1, 2], strides = [1, 1]} : vector<4x2xf32> to vector<1x2xf32>
    %24 = vector.extract_strided_slice %2 {offsets = [1, 0], sizes = [1, 2], strides = [1, 1]} : vector<4x2xf32> to vector<1x2xf32>
    %cst_11 = arith.constant 0.000000e+00 : f32
    %25 = vector.broadcast %cst_11 : f32 to vector<1x2xf32>
    %26 = arith.subf %25, %24 : vector<1x2xf32>
    %27 = vector.extract_strided_slice %2 {offsets = [2, 0], sizes = [1, 2], strides = [1, 1]} : vector<4x2xf32> to vector<1x2xf32>
    %cst_12 = arith.constant 0.000000e+00 : f32
    %28 = vector.broadcast %cst_12 : f32 to vector<1x2xf32>
    %29 = arith.subf %28, %27 : vector<1x2xf32>
    %30 = vector.extract_strided_slice %2 {offsets = [3, 0], sizes = [1, 2], strides = [1, 1]} : vector<4x2xf32> to vector<1x2xf32>
    %cst_13 = arith.constant 0.000000e+00 : f32
    %31 = vector.broadcast %cst_13 : f32 to vector<1x2xf32>
    %32 = arith.subf %31, %30 : vector<1x2xf32>
    %33 = arith.mulf %23, %19 : vector<1x2xf32>
    %34 = arith.mulf %26, %20 : vector<1x2xf32>
    %35 = arith.subf %33, %34 : vector<1x2xf32>
    %36 = arith.mulf %29, %21 : vector<1x2xf32>
    %37 = arith.subf %35, %36 : vector<1x2xf32>
    %38 = arith.mulf %32, %22 : vector<1x2xf32>
    %39 = arith.subf %37, %38 : vector<1x2xf32>
    %40 = arith.mulf %23, %20 : vector<1x2xf32>
    %41 = arith.mulf %26, %19 : vector<1x2xf32>
    %42 = arith.addf %40, %41 : vector<1x2xf32>
    %43 = arith.mulf %29, %22 : vector<1x2xf32>
    %44 = arith.subf %42, %43 : vector<1x2xf32>
    %45 = arith.mulf %32, %21 : vector<1x2xf32>
    %46 = arith.addf %44, %45 : vector<1x2xf32>
    %47 = arith.mulf %23, %21 : vector<1x2xf32>
    %48 = arith.mulf %26, %22 : vector<1x2xf32>
    %49 = arith.addf %47, %48 : vector<1x2xf32>
    %50 = arith.mulf %29, %19 : vector<1x2xf32>
    %51 = arith.addf %49, %50 : vector<1x2xf32>
    %52 = arith.mulf %32, %20 : vector<1x2xf32>
    %53 = arith.subf %51, %52 : vector<1x2xf32>
    %54 = arith.mulf %23, %22 : vector<1x2xf32>
    %55 = arith.mulf %26, %21 : vector<1x2xf32>
    %56 = arith.subf %54, %55 : vector<1x2xf32>
    %57 = arith.mulf %29, %20 : vector<1x2xf32>
    %58 = arith.addf %56, %57 : vector<1x2xf32>
    %59 = arith.mulf %32, %19 : vector<1x2xf32>
    %60 = arith.addf %58, %59 : vector<1x2xf32>
    %61 = arith.mulf %46, %46 : vector<1x2xf32>
    %62 = arith.mulf %53, %53 : vector<1x2xf32>
    %63 = arith.addf %61, %62 : vector<1x2xf32>
    %64 = arith.mulf %60, %60 : vector<1x2xf32>
    %65 = arith.addf %63, %64 : vector<1x2xf32>
    %66 = math.sqrt %65 : vector<1x2xf32>
    %c0_14 = arith.constant 0 : index
    %c0_15 = arith.constant 0 : index
    %67 = vector.load %arg5[%c0_14, %c0_15] : memref<2x2xf32, #tpu.memory_space<vmem>>, vector<1x2xf32>
    tpu.vector_store %arg5[%c0_14, %c0_15], %66 {strides = array<i32>} : memref<2x2xf32, #tpu.memory_space<vmem>>, vector<1x2xf32>,
    %68 = math.absf %39 : vector<1x2xf32>
    %c1 = arith.constant 1 : index
    %c0_16 = arith.constant 0 : index
    %69 = vector.load %arg5[%c1, %c0_16] : memref<2x2xf32, #tpu.memory_space<vmem>>, vector<1x2xf32>
    tpu.vector_store %arg5[%c1, %c0_16], %68 {strides = array<i32>} : memref<2x2xf32, #tpu.memory_space<vmem>>, vector<1x2xf32>,
    return
  }
}

</mosaic_0001>

<bundles_post_ra>
// kernel: geometric_loss_forward.1
= control target key start
LH: loop header
LB: loop body
LE: loop exit
PB: predicated region body
PF: predicated region fallthrough
CT: control target
= control target key end

     0   :  { %s222_s0 = inlined_call_operand.vmem [shape: f32[3,2], index: 0, kind: input, shape index: {}]   ;;  %s223_s1 = inlined_call_operand.vmem [shape: f32[3,2], index: 1, kind: input, shape index: {}]   ;;  %s224_s2 = inlined_call_operand.vmem [shape: f32[4,2], index: 2, kind: input, shape index: {}]   ;;  %s225_s3 = inlined_call_operand.vmem [shape: f32[4,2], index: 3, kind: input, shape index: {}]   ;;  %s226_s4 = inlined_call_operand.hbm [shape: f32[1], index: 4, kind: output, shape index: {0}]   ;;  %s227_s5 = inlined_call_operand.vmem [shape: f32[2,2], index: 5, kind: output, shape index: {1}]  }
   0x1   :  { %v20_v0 = vld [vmem:[%s222_s0] sm:$0x7] }
   0x2   :  { %v21_v1 = vld [vmem:[%s223_s1] sm:$0x7] }
   0x3   :  { %v24_v2 = vsub.f32 %v21_v1, %v20_v0 }
   0x4   :  { %11 = vsyncpa [#allocation3], 0  ;;  %vm31_vm1 = vcmask 10240   ;;  %v22_v9 = vld [vmem:[%s224_s2] sm:$0xf]  ;;  %vm122_vm4 = vcmask 8192  }
   0x5   :  { %v25_v3 = vand.u32 2147483647, %v24_v2  ;;  %v27_v4 = vmul.f32 0.5, %v24_v2  ;;  %v23_v10 = vld [vmem:[%s225_s3] sm:$0xf]  ;;  %v44_v11 = vsub.f32 0.0, %v22_v9 }
   0x6   :  { %v61_v12 = vrot.slane %v23_v10, 7  ;;  %v76_v13 = vrot.slane %v23_v10, 2  ;;  %v58_v14 = vrot.slane %v23_v10, 1  ;;  %v84_v17 = vrot.slane %v23_v10, 6  ;;  %s149_s29 = scalar_lea.hbm %s226_s4, 16 }
   0x7   :  { %vm26_vm0 = vcmp.lt.f32.partialorder %v25_v3, 1.0  ;;  %v28_v5 = vmul.f32 %v27_v4, %v24_v2  ;;  %v143_v6 = vadd.f32 -0.5, %v25_v3  ;;  %v94_v24 = vrot.slane %v23_v10, 3  ;;  %p150_p0 = scmp.ne.s32.totalorder %s226_s4, %s149_s29  ;;  %p153_p1 = scmp.lt.u32.totalorder %s149_s29, %s226_s4 }
   0x8   :  { %v63_v15 = vmul.f32 %v61_v12, %v44_v11  ;;  %v79_v16 = vmul.f32 %v76_v13, %v44_v11  ;;  %v60_v18 = vmul.f32 %v58_v14, %v22_v9  ;;  %v68_v20 = vmul.f32 %v58_v14, %v44_v11 }
   0x9   :  { %v30_v7 = vsel %vm26_vm0, %v28_v5, %v143_v6  ;;  %v78_v21 = vmul.f32 %v76_v13, %v22_v9  ;;  %v86_v23 = vmul.f32 %v84_v17, %v44_v11  ;;  %v103_v28 = vrot.slane %v23_v10, 5  ;;  %p155_p2 = pnand %p153_p1, %p150_p0 }
   0xa   :  { %v32_v8 = vsel %vm31_vm1, %v30_v7, 0.0  ;;  %v65_v19 = vrot.slane %v63_v15, 1  ;;  %v81_v22 = vrot.slane %v79_v16, 1  ;;  %v70_v26 = vrot.slane %v68_v20, 2 }
   0xb   :  { %33 = vadd.xlane.f32.xlu0 %v32_v8  ;;  %v97_v27 = vrot.slane %v68_v20, 1  ;;  %v88_v30 = vrot.slane %v86_v23, 2  ;;  %v96_v31 = vmul.f32 %v94_v24, %v22_v9  ;;  %v73_v33 = vrot.slane %v63_v15, 3 }
   0xc   :  { %v67_v25 = vadd.f32 %v65_v19, %v60_v18  ;;  %v83_v29 = vadd.f32 %v81_v22, %v78_v21  ;;  %v91_v34 = vrot.slane %v86_v23, 3  ;;  %v100_v35 = vrot.slane %v63_v15, 2 }
   0xd   :  { %v99_v37 = vsub.f32 %v96_v31, %v97_v27  ;;  %v105_v38 = vmul.f32 %v103_v28, %v44_v11  ;;  %v46_v49 = vmul.f32 %v44_v11, %v23_v10  ;;  %v45_v50 = vmul.f32 %v23_v10, %v22_v9 }
   0xe   :  { %v72_v32 = vsub.f32 %v67_v25, %v70_v26  ;;  %v90_v36 = vadd.f32 %v88_v30, %v83_v29 }
   0xf   :  { %v102_v41 = vadd.f32 %v100_v35, %v99_v37  ;;  %v107_v42 = vrot.slane %v105_v38, 3  ;;  %v48_v51 = vrot.slane %v46_v49, 1  ;;  %v51_v53 = vrot.slane %v46_v49, 2 }
  0x10   :  { %v75_v39 = vadd.f32 %v73_v33, %v72_v32  ;;  %v93_v40 = vsub.f32 %v90_v36, %v91_v34  ;;  %v54_v55 = vrot.slane %v46_v49, 3 }
  0x11   :  { %v109_v44 = vadd.f32 %v107_v42, %v102_v41  ;;  %v50_v52 = vsub.f32 %v45_v50, %v48_v51 }
  0x12   :  { %v110_v43 = vmul.f32 %v75_v39, %v75_v39  ;;  %v111_v45 = vmul.f32 %v93_v40, %v93_v40 }
  0x13   :  { %v113_v47 = vmul.f32 %v109_v44, %v109_v44  ;;  %v53_v54 = vsub.f32 %v50_v52, %v51_v53 }
  0x14   :  { %v112_v46 = vadd.f32 %v111_v45, %v110_v43 }
  0x15   :  { %v56_v57 = vsub.f32 %v53_v54, %v54_v55 }
  0x16   :  { %v114_v48 = vadd.f32 %v113_v47, %v112_v46 }
  0x17   :  { %v124_v60 = vand.u32 2147483647, %v56_v57 }
  0x18   :  { %147 = vrsqrt.f32 %v114_v48  ;;  %vm117_vm2 = vcmp.eq.f32.partialorder %v114_v48, inf  ;;  %v120_v59 = vand.u32 2147483648, %v114_v48  ;;  %vm119_vm3 = vcmp.eq.f32.partialorder %v114_v48, 0.0 }
  0x19   :  { %125 = vst.msk [vmem:[%s227_s5 + $0x1] sm:$0x1] %vm122_vm4, %v124_v60 }
  0x22   :  { %v148_v56 = vpop.eup %147 }
  0x23   :  { %v116_v58 = vmul.f32 %v148_v56, %v114_v48 }
  0x25   :  { %v118_v61 = vsel %vm117_vm2, %v114_v48, %v116_v58 }
  0x26   :  { %v121_v62 = vsel %vm119_vm3, %v120_v59, %v118_v61 }
  0x27   :  { %123 = vst.msk [vmem:[%s227_s5] sm:$0x1] %vm122_vm4, %v121_v62 }
  0x98   :  { %v34_v63 = vpop.xlane.xlu0 %33 }
  0x99   :  { %v35_v0 = vrot.slane %v34_v63, 4 }
  0x9b   :  { %v36_v1 = vadd.f32 %v35_v0, %v34_v63 }
  0x9d   :  { %v37_v2 = vrot.slane %v36_v1, 2 }
  0x9f   :  { %v38_v3 = vadd.f32 %v37_v2, %v36_v1 }
  0xa1   :  { %v39_v4 = vrot.slane %v38_v3, 1 }
  0xa3   :  { %v40_v5 = vadd.f32 %v39_v4, %v38_v3 }
  0xa5   :  { %144 = vpush %v40_v5 }
  0xd6   :  { %s145_s26 = spop %144 }
  0xd7   :  { %43 = sst [smem:[#allocation2]] %s145_s26 }
  0xd8   :  { %158 = shalt.err (!%p155_p2)
}
  0xd9   :  { %s161_s8 = smov [#allocation2]  }
  0xda   :  { %133 = dma.smem_to_hbm %s161_s8, 16, %s226_s4, [#allocation3]  }
  0xdb   :  { %159 = dma.done.wait [#allocation3], 16  }
  0xdc   :  { %160 = vsyncadd [#allocation3], 4294967280 }
  0xdd   :  { %141 = sfence }
  0xde   :  { %142 = vsyncpa [#allocation3], 1 }

</bundles_post_ra>
